<compile_context>
chip_gen: v7x
topology: tpu7x:2x2x1
jax: 0.10.0
libtpu: 0.0.40
codegen_flags: <defaults>
</compile_context>

<pallas_src>
import jax
import jax.numpy as jnp
from jax.experimental import pallas as pl
from jax.experimental.pallas import tpu as pltpu

EPS = 1e-5  # nn.LayerNorm default


def addnorm_kernel(x_ref, y_ref, gamma_ref, beta_ref, o_ref):
    # Residual add (dropout(Y) = identity in eval mode). Compute in f32.
    z = x_ref[...].astype(jnp.float32) + y_ref[...].astype(jnp.float32)

    # LayerNorm over the last (hidden / lane) axis.
    mean = jnp.mean(z, axis=-1, keepdims=True)
    centered = z - mean
    var = jnp.mean(centered * centered, axis=-1, keepdims=True)
    inv_std = jax.lax.rsqrt(var + EPS)
    normed = centered * inv_std

    gamma = gamma_ref[...].astype(jnp.float32)  # (1, hidden) -> broadcast
    beta = beta_ref[...].astype(jnp.float32)
    o_ref[...] = (normed * gamma + beta).astype(o_ref.dtype)


def _pick_block_rows(rows, hidden, dtype_bytes, vmem_budget_bytes):
    """Largest row tile that fits the VMEM budget (3 arrays x 2 buffers each)."""
    sublane = 16 if dtype_bytes < 4 else 8  # bf16 packs 16 rows per vreg
    # Tiny input: one block covers everything -> single grid step, no per-step
    # pipeline overhead, single (masked if hidden<128) store.
    if rows <= 1024 and 3 * 2 * rows * hidden * dtype_bytes <= vmem_budget_bytes:
        return int(rows)
    bytes_per_row = 3 * 2 * hidden * dtype_bytes  # x, y, out double-buffered
    budget_rows = max(vmem_budget_bytes // bytes_per_row, sublane)
    block = min(budget_rows, 1024)  # >=512 already hits ~85% of HBM roofline
    # Keep >= ~4 grid steps so the row axis actually shards across v7x's 2 TCs.
    block = min(block, max(pl.cdiv(rows, 4), sublane))
    block = max((block // sublane) * sublane, sublane)
    return int(block)


def add_norm(x, y, gamma, beta, *, block_rows=None,
             vmem_budget_bytes=32 * 1024 * 1024):
    """x, y: [rows, hidden]; gamma, beta: [hidden]."""
    rows, hidden = x.shape
    dtype_bytes = jnp.dtype(x.dtype).itemsize
    if block_rows is None:
        block_rows = _pick_block_rows(rows, hidden, dtype_bytes,
                                      vmem_budget_bytes)

    # Ragged rows: pad to a multiple of block_rows (padded rows are computed
    # with zero inputs -> finite values, then dropped).
    padded_rows = pl.cdiv(rows, block_rows) * block_rows
    xp, yp = x, y
    if padded_rows != rows:
        pad = padded_rows - rows
        xp = jnp.pad(x, ((0, pad), (0, 0)))
        yp = jnp.pad(y, ((0, pad), (0, 0)))

    gamma2d = gamma.reshape(1, hidden)
    beta2d = beta.reshape(1, hidden)

    # Raise the scoped VMEM limit so the large tile actually compiles; stay
    # within v7x's 64 MiB physical VMEM per TensorCore.
    tile_bytes = 3 * 2 * block_rows * hidden * dtype_bytes
    vmem_limit = int(min(max(2 * tile_bytes, 16 * 1024 * 1024),
                         64 * 1024 * 1024))

    grid = (padded_rows // block_rows,)
    out = pl.pallas_call(
        addnorm_kernel,
        out_shape=jax.ShapeDtypeStruct((padded_rows, hidden), x.dtype),
        grid_spec=pltpu.PrefetchScalarGridSpec(
            num_scalar_prefetch=0,
            grid=grid,
            in_specs=[
                pl.BlockSpec((block_rows, hidden), lambda i: (i, 0)),
                pl.BlockSpec((block_rows, hidden), lambda i: (i, 0)),
                pl.BlockSpec((1, hidden), lambda i: (0, 0)),
                pl.BlockSpec((1, hidden), lambda i: (0, 0)),
            ],
            out_specs=pl.BlockSpec((block_rows, hidden), lambda i: (i, 0)),
        ),
        compiler_params=pltpu.CompilerParams(
            dimension_semantics=("parallel",),
            vmem_limit_bytes=vmem_limit,
        ),
        cost_estimate=pl.CostEstimate(
            flops=10 * padded_rows * hidden,
            transcendentals=padded_rows,
            bytes_accessed=3 * padded_rows * hidden * dtype_bytes,
        ),
    )(xp, yp, gamma2d, beta2d)

    if padded_rows != rows:
        out = out[:rows]
    return out


def _reference(X, Y, gamma, beta):
    z = X + Y  # eval-mode dropout = identity
    mean = jnp.mean(z, axis=-1, keepdims=True)
    var = jnp.mean((z - mean) ** 2, axis=-1, keepdims=True)
    return (z - mean) / jnp.sqrt(var + EPS) * gamma + beta


if __name__ == "__main__":
    batch, seq, hidden = 2, 8, 32  # norm_shape = hidden = 32

    key = jax.random.PRNGKey(0)
    kx, ky = jax.random.split(key)
    X = jax.random.normal(kx, (batch, seq, hidden), dtype=jnp.float32)
    Y = jax.random.normal(ky, (batch, seq, hidden), dtype=jnp.float32)

    # nn.LayerNorm default init: weight = ones, bias = zeros.
    gamma = jnp.ones((hidden,), dtype=jnp.float32)
    beta = jnp.zeros((hidden,), dtype=jnp.float32)

    x2d = X.reshape(batch * seq, hidden)
    y2d = Y.reshape(batch * seq, hidden)

    out = add_norm(x2d, y2d, gamma, beta).reshape(batch, seq, hidden)
    out = jax.block_until_ready(out)
    ref = _reference(X, Y, gamma, beta)
    assert jnp.allclose(out, ref, atol=1e-5, rtol=1e-5)

    # Ragged-rows path (explicit small block forces padding + slice).
    rows_r = 13
    xr = jax.random.normal(kx, (rows_r, hidden), dtype=jnp.float32)
    yr = jax.random.normal(ky, (rows_r, hidden), dtype=jnp.float32)
    out_r = jax.block_until_ready(add_norm(xr, yr, gamma, beta, block_rows=8))
    ref_r = _reference(xr, yr, gamma, beta)
    assert out_r.shape == (rows_r, hidden)
    assert jnp.allclose(out_r, ref_r, atol=1e-5, rtol=1e-5)

    print("KERNEL_OK")
</pallas_src>

<mosaic_0001>
module attributes {stable_mosaic.version = 11 : i64} {
  func.func @addnorm_kernel(%arg0: i32, %arg1: memref<16x32xf32, #tpu.memory_space<vmem>>, %arg2: memref<16x32xf32, #tpu.memory_space<vmem>>, %arg3: memref<1x32xf32, #tpu.memory_space<vmem>>, %arg4: memref<1x32xf32, #tpu.memory_space<vmem>>, %arg5: memref<16x32xf32, #tpu.memory_space<vmem>>) attributes {dimension_semantics = [#tpu.dimension_semantics<parallel>], iteration_bounds = array<i64: 1>, scalar_prefetch = 0 : i64, scratch_operands = 0 : i64, tpu.core_type = #tpu.core_type<tc>, window_params = [{transform_indices = @transform_0, window_bounds = array<i64: 16, 32>}, {transform_indices = @transform_1, window_bounds = array<i64: 16, 32>}, {pipeline_mode = #tpu.pipeline_mode<synchronous>, transform_indices = @transform_2, window_bounds = array<i64: 1, 32>}, {pipeline_mode = #tpu.pipeline_mode<synchronous>, transform_indices = @transform_3, window_bounds = array<i64: 1, 32>}, {transform_indices = @transform_4, window_bounds = array<i64: 16, 32>}]} {
    %c0 = arith.constant 0 : index
    %c0_0 = arith.constant 0 : index
    %0 = vector.load %arg1[%c0, %c0_0] : memref<16x32xf32, #tpu.memory_space<vmem>>, vector<16x32xf32>
    %c0_1 = arith.constant 0 : index
    %c0_2 = arith.constant 0 : index
    %1 = vector.load %arg2[%c0_1, %c0_2] : memref<16x32xf32, #tpu.memory_space<vmem>>, vector<16x32xf32>
    %2 = arith.addf %0, %1 : vector<16x32xf32>
    %cst = arith.constant dense<0.000000e+00> : vector<16xf32>
    %3 = vector.multi_reduction <add>, %2, %cst [1] : vector<16x32xf32> to vector<16xf32>
    %4 = vector.shape_cast %3 : vector<16xf32> to vector<16x1xf32>
    %cst_3 = arith.constant 3.200000e+01 : f32
    %5 = vector.broadcast %cst_3 : f32 to vector<16x1xf32>
    %6 = arith.divf %4, %5 : vector<16x1xf32>
    %7 = vector.broadcast %6 : vector<16x1xf32> to vector<16x32xf32>
    %8 = arith.subf %2, %7 : vector<16x32xf32>
    %9 = arith.mulf %8, %8 : vector<16x32xf32>
    %cst_4 = arith.constant dense<0.000000e+00> : vector<16xf32>
    %10 = vector.multi_reduction <add>, %9, %cst_4 [1] : vector<16x32xf32> to vector<16xf32>
    %11 = vector.shape_cast %10 : vector<16xf32> to vector<16x1xf32>
    %cst_5 = arith.constant 3.200000e+01 : f32
    %12 = vector.broadcast %cst_5 : f32 to vector<16x1xf32>
    %13 = arith.divf %11, %12 : vector<16x1xf32>
    %cst_6 = arith.constant 9.99999974E-6 : f32
    %14 = vector.broadcast %cst_6 : f32 to vector<16x1xf32>
    %15 = arith.addf %13, %14 : vector<16x1xf32>
    %16 = math.rsqrt %15 : vector<16x1xf32>
    %17 = vector.broadcast %16 : vector<16x1xf32> to vector<16x32xf32>
    %18 = arith.mulf %8, %17 : vector<16x32xf32>
    %c0_7 = arith.constant 0 : index
    %c0_8 = arith.constant 0 : index
    %19 = vector.load %arg3[%c0_7, %c0_8] : memref<1x32xf32, #tpu.memory_space<vmem>>, vector<1x32xf32>
    %c0_9 = arith.constant 0 : index
    %c0_10 = arith.constant 0 : index
    %20 = vector.load %arg4[%c0_9, %c0_10] : memref<1x32xf32, #tpu.memory_space<vmem>>, vector<1x32xf32>
    %21 = vector.broadcast %19 : vector<1x32xf32> to vector<16x32xf32>
    %22 = arith.mulf %18, %21 : vector<16x32xf32>
    %23 = vector.broadcast %20 : vector<1x32xf32> to vector<16x32xf32>
    %24 = arith.addf %22, %23 : vector<16x32xf32>
    %c0_11 = arith.constant 0 : index
    %c0_12 = arith.constant 0 : index
    %25 = vector.load %arg5[%c0_11, %c0_12] : memref<16x32xf32, #tpu.memory_space<vmem>>, vector<16x32xf32>
    tpu.vector_store %arg5[%c0_11, %c0_12], %24 {strides = array<i32>} : memref<16x32xf32, #tpu.memory_space<vmem>>, vector<16x32xf32>,
    return
  }
  func.func @transform_0(%arg0: i32) -> (i32, i32) {
    %c0_i32 = arith.constant 0 : i32
    %c0_i32_0 = arith.constant 0 : i32
    return %arg0, %c0_i32 : i32, i32
  }
  func.func @transform_1(%arg0: i32) -> (i32, i32) {
    %c0_i32 = arith.constant 0 : i32
    %c0_i32_0 = arith.constant 0 : i32
    return %arg0, %c0_i32 : i32, i32
  }
  func.func @transform_2(%arg0: i32) -> (i32, i32) {
    %c0_i32 = arith.constant 0 : i32
    %c0_i32_0 = arith.constant 0 : i32
    %c0_i32_1 = arith.constant 0 : i32
    return %c0_i32, %c0_i32_0 : i32, i32
  }
  func.func @transform_3(%arg0: i32) -> (i32, i32) {
    %c0_i32 = arith.constant 0 : i32
    %c0_i32_0 = arith.constant 0 : i32
    %c0_i32_1 = arith.constant 0 : i32
    return %c0_i32, %c0_i32_0 : i32, i32
  }
  func.func @transform_4(%arg0: i32) -> (i32, i32) {
    %c0_i32 = arith.constant 0 : i32
    %c0_i32_0 = arith.constant 0 : i32
    return %arg0, %c0_i32 : i32, i32
  }
}

</mosaic_0001>

<bundles_post_ra>
// kernel: tpu_custom_call.1
= control target key start
LH: loop header
LB: loop body
LE: loop exit
PB: predicated region body
PF: predicated region fallthrough
CT: control target
= control target key end

     0   :  { %9 = vsyncpa [#allocation3], 0  ;;  %s288_s0 = inlined_call_operand.hbm [shape: f32[16,32], index: 0, kind: input, shape index: {}]   ;;  %s289_s1 = inlined_call_operand.hbm [shape: f32[16,32], index: 1, kind: input, shape index: {}]   ;;  %s290_s2 = inlined_call_operand.vmem [shape: f32[1,32], index: 2, kind: input, shape index: {}]   ;;  %s291_s3 = inlined_call_operand.vmem [shape: f32[1,32], index: 3, kind: input, shape index: {}]   ;;  %s292_s4 = inlined_call_operand.hbm [shape: f32[16,32], index: 4, kind: output, shape index: {}]  }
   0x1   :  { %10 = vsyncpa [#allocation6], 0 }
   0x2   :  { %11 = vsyncpa [#allocation4], 0  ;;  %s201_s15 = smov [#allocation2]   ;;  %s129_s19 = scalar_lea.hbm %s288_s0, 256 }
   0x3   :  { %s17_s16 = sshll.u32 %s201_s15, 4  ;;  %p130_p0 = scmp.ne.s32.totalorder %s288_s0, %s129_s19  ;;  %s18_s16 = int_to_ptr.vmem [resolvable:$true] %s17_s16 }
   0x4   :  { %p133_p1 = scmp.lt.u32.totalorder %s129_s19, %s288_s0 }
   0x6   :  { %p135_p2 = pnand %p133_p1, %p130_p0 }
   0x8   :  { %138 = shalt.err (!%p135_p2)
}
   0x9   :  { %s139_s24 = scalar_lea.vmem %s18_s16, 256  ;;  %p144_p4 = scmp.lt.s32.totalorder %s18_s16, %s18_s16 }
   0xa   :  { %p140_p3 = scmp.ne.s32.totalorder %s18_s16, %s139_s24  ;;  %p145_p5 = scmp.lt.s32.totalorder %s139_s24, %s139_s24 }
   0xc   :  { %p146_p6 = por %p145_p5, %p144_p4 }
   0xe   :  { %p147_p7 = pnand %p146_p6, %p140_p3 }
  0x10   :  { %150 = shalt.err (!%p147_p7)
}
  0x11   :  { %s202_s25 = smov 128   ;;  %s203_s26 = smov 8  }
  0x12   :  { %23 = dma.hbm_to_vmem [thread:$0]  %s288_s0, 256, %s18_s16, [#allocation3], %s202_s25, %s202_s25, %s203_s26  }
  0x13   :  { %s204_s29 = smov [#allocation5]   ;;  %s151_s7 = scalar_lea.hbm %s289_s1, 256 }
  0x14   :  { %s29_s30 = sshll.u32 %s204_s29, 4  ;;  %p152_p8 = scmp.ne.s32.totalorder %s289_s1, %s151_s7  ;;  %s30_s30 = int_to_ptr.vmem [resolvable:$true] %s29_s30 }
  0x15   :  { %p155_p9 = scmp.lt.u32.totalorder %s151_s7, %s289_s1 }
  0x17   :  { %p157_p10 = pnand %p155_p9, %p152_p8 }
  0x19   :  { %160 = shalt.err (!%p157_p10)
}
  0x1a   :  { %s161_s12 = scalar_lea.vmem %s30_s30, 256  ;;  %p166_p12 = scmp.lt.s32.totalorder %s30_s30, %s30_s30 }
  0x1b   :  { %p162_p11 = scmp.ne.s32.totalorder %s30_s30, %s161_s12  ;;  %p167_p13 = scmp.lt.s32.totalorder %s161_s12, %s161_s12 }
  0x1d   :  { %p168_p0 = por %p167_p13, %p166_p12 }
  0x1f   :  { %p169_p1 = pnand %p168_p0, %p162_p11 }
  0x21   :  { %172 = shalt.err (!%p169_p1)
}
  0x22   :  { %35 = dma.hbm_to_vmem [thread:$0]  %s289_s1, 256, %s30_s30, [#allocation6], %s202_s25, %s202_s25, %s203_s26  }
  0x23   :  { %195 = dma.done.wait [#allocation3], 256  }
  0x24   :  { %196 = vsyncadd [#allocation3], 4294967040 }
  0x25   :  { %197 = dma.done.wait [#allocation6], 256  }
  0x26   :  { %198 = vsyncadd [#allocation6], 4294967040  ;;  %v46_v0 = vld [vmem:[#allocation2] sm:$0xff]  ;;  %v48_v1 = vld [vmem:[#allocation5] sm:$0xff]  ;;  %vm52_vm0 = vcmask 261120   ;;  %s205_s17 = smov [#allocation7]  }
  0x27   :  { %v47_v2 = vld [vmem:[#allocation2 + $0x8] sm:$0xff]  ;;  %v50_v3 = vadd.f32 %v48_v1, %v46_v0  ;;  %v49_v4 = vld [vmem:[#allocation5 + $0x8] sm:$0xff]  ;;  %v118_v25 = vld [vmem:[%s290_s2] ss:$0 sm:$0xff]  ;;  %s105_s18 = sshll.u32 %s205_s17, 4  ;;  %s106_s18 = int_to_ptr.vmem [resolvable:$true] %s105_s18 }
  0x28   :  { %v51_v5 = vadd.f32 %v49_v4, %v47_v2  ;;  %v119_v27 = vld [vmem:[%s291_s3] ss:$0 sm:$0xff]  ;;  %s173_s19 = scalar_lea.vmem %s106_s18, 256  ;;  %p178_p3 = scmp.lt.s32.totalorder %s106_s18, %s106_s18 }
  0x29   :  { %v53_v6 = vsel %vm52_vm0, %v50_v3, 0.0  ;;  %p174_p2 = scmp.ne.s32.totalorder %s106_s18, %s173_s19  ;;  %p179_p4 = scmp.lt.s32.totalorder %s173_s19, %s173_s19 }
  0x2a   :  { %54 = vadd.xlane.f32.xlu0 %v53_v6  ;;  %v56_v7 = vsel %vm52_vm0, %v51_v5, 0.0 }
  0x2b   :  { %p180_p5 = por %p179_p4, %p178_p3 }
  0x2d   :  { %p181_p6 = pnand %p180_p5, %p174_p2 }
  0x2e   :  { %57 = vadd.xlane.f32.xlu0 %v56_v7 }
  0xb7   :  { %v55_v8 = vpop.xlane.xlu0 %54 }
  0xb8   :  { %v60_v9 = vmul.f32 0.03125, %v55_v8 }
  0xba   :  { %v62_v10 = vsub.f32 %v50_v3, %v60_v9 }
  0xbb   :  { %v58_v11 = vpop.xlane.xlu0 %57 }
  0xbc   :  { %v61_v12 = vmul.f32 0.03125, %v58_v11  ;;  %v64_v13 = vmul.f32 %v62_v10, %v62_v10 }
  0xbe   :  { %v63_v14 = vsub.f32 %v51_v5, %v61_v12  ;;  %v66_v15 = vsel %vm52_vm0, %v64_v13, 0.0 }
  0xbf   :  { %67 = vadd.xlane.f32.xlu1 %v66_v15 }
  0xc0   :  { %v65_v16 = vmul.f32 %v63_v14, %v63_v14 }
  0xc2   :  { %v69_v17 = vsel %vm52_vm0, %v65_v16, 0.0 }
  0xc3   :  { %70 = vadd.xlane.f32.xlu1 %v69_v17 }
 0x14c   :  { %v68_v18 = vpop.xlane.xlu1 %67 }
 0x14d   :  { %v72_v19 = vmul.f32 0.03125, %v68_v18 }
 0x14f   :  { %v74_v20 = vadd.f32 1e-05, %v72_v19 }
 0x150   :  { %v71_v21 = vpop.xlane.xlu1 %70 }
 0x151   :  { %125 = vrsqrt.f32 %v74_v20  ;;  %v73_v22 = vmul.f32 0.03125, %v71_v21 }
 0x153   :  { %v75_v23 = vadd.f32 1e-05, %v73_v22 }
 0x155   :  { %127 = vrsqrt.f32 %v75_v23 }
 0x15b   :  { %v126_v24 = vpop.eup %125 }
 0x15c   :  { %v78_v26 = vmul.f32 %v126_v24, %v62_v10 }
 0x15e   :  { %v88_v28 = vmul.f32 %v118_v25, %v78_v26 }
 0x15f   :  { %v128_v29 = vpop.eup %127 }
 0x160   :  { %v79_v30 = vmul.f32 %v128_v29, %v63_v14  ;;  %v96_v31 = vadd.f32 %v119_v27, %v88_v28 }
 0x162   :  { %v89_v32 = vmul.f32 %v118_v25, %v79_v30  ;;  %98 = vst.msk [vmem:[#allocation7] sm:$0xff] %vm52_vm0, %v96_v31 }
 0x164   :  { %v97_v33 = vadd.f32 %v119_v27, %v89_v32 }
 0x166   :  { %99 = vst.msk [vmem:[#allocation7 + $0x8] sm:$0xff] %vm52_vm0, %v97_v33 }
 0x167   :  { %184 = shalt.err (!%p181_p6)
}
 0x168   :  { %s185_s20 = scalar_lea.hbm %s292_s4, 256 }
 0x169   :  { %p186_p7 = scmp.ne.s32.totalorder %s292_s4, %s185_s20  ;;  %p189_p8 = scmp.lt.u32.totalorder %s185_s20, %s292_s4 }
 0x16b   :  { %p191_p9 = pnand %p189_p8, %p186_p7 }
 0x16d   :  { %194 = shalt.err (!%p191_p9)
}
 0x16e   :  { %111 = dma.vmem_to_hbm [thread:$0]  %s106_s18, 256, %s292_s4, [#allocation4], %s202_s25, %s202_s25, %s203_s26  }
 0x16f   :  { %199 = dma.done.wait [#allocation4], 256  }
 0x170   :  { %200 = vsyncadd [#allocation4], 4294967040 }
 0x171   :  { %115 = vsyncpa [#allocation3], 1 }
 0x172   :  { %116 = vsyncpa [#allocation6], 1 }
 0x173   :  { %117 = vsyncpa [#allocation4], 1 }

</bundles_post_ra>
